<compile_context>
chip_gen: v7x
topology: tpu7x:2x2x1
jax: 0.10.0
libtpu: 0.0.40
codegen_flags: <defaults>
</compile_context>

<pallas_src>
import jax
import jax.numpy as jnp
from jax.experimental import pallas as pl
from jax.experimental.pallas import tpu as pltpu

D_MODEL = 32   # channels (dim)
SEQ = 16       # sequence length
BATCH = 2


# ----------------------------------------------------------------------------
# Pallas kernel: out = x * (x @ T + bias), all operands resident in VMEM.
# ----------------------------------------------------------------------------
def lka_kernel(x_ref,      # (B, C*L)   input rows (one row per batch element)
               t_ref,      # (C*L, C*L) fused affine operator (attn = x @ T + b)
               b_ref,      # (1, C*L)   fused bias row
               out_ref):   # (B, C*L)
    x = x_ref[...]
    attn = jnp.dot(x, t_ref[...], preferred_element_type=jnp.float32) + b_ref[...]
    out_ref[...] = x * attn


@jax.jit
def lka_forward(x_ncl, t_mat, bias_row):
    """x_ncl: (B, C, L) float32, PyTorch NCW layout. Returns (B, C, L)."""
    B, C, L = x_ncl.shape
    CL = C * L
    x2d = x_ncl.reshape(B, CL)          # contiguous reshape: metadata only

    vmem = pl.BlockSpec(memory_space=pltpu.MemorySpace.VMEM)
    out2d = pl.pallas_call(
        lka_kernel,
        out_shape=jax.ShapeDtypeStruct((B, CL), jnp.float32),
        in_specs=[vmem, vmem, vmem],
        out_specs=vmem,
    )(x2d, t_mat, bias_row)

    return out2d.reshape(B, C, L)       # free reshape back to NCW


# ----------------------------------------------------------------------------
# Host-side packing: build the fused (C*L, C*L) operator + bias by probing the
# exact affine attn chain with basis vectors (done once, at parameter time).
# ----------------------------------------------------------------------------
def _attn_chain(x, w0, b0, ws, bs, w1, b1):
    """conv0 -> conv_spatial -> conv1 (with biases), NCW layout, pure JAX."""
    def dwconv(h, w, b, ksize, dil, pad):
        _, _, Ll = h.shape
        hp = jnp.pad(h, ((0, 0), (0, 0), (pad, pad)))
        out = jnp.zeros_like(h)
        for k in range(ksize):
            out = out + w[k][None, :, None] * jax.lax.dynamic_slice_in_dim(
                hp, k * dil, Ll, axis=2)
        return out + b[None, :, None]

    a = dwconv(x, w0, b0, 5, 1, 2)                       # conv0
    a = dwconv(a, ws, bs, 7, 3, 9)                       # conv_spatial
    a = jnp.einsum('oc,bcl->bol', w1, a,
                   precision=jax.lax.Precision.HIGHEST) + b1[None, :, None]
    return a


def pack_affine(C, L, w0, b0, ws, bs, w1, b1):
    """Return (T, bias_row) with attn_flat = x_flat @ T + bias_row.

    w0: (5, C), b0: (C,)   — conv0 depthwise taps / bias
    ws: (7, C), bs: (C,)   — conv_spatial depthwise taps / bias
    w1: (C, C), b1: (C,)   — conv1 weight (out, in) / bias
    """
    CL = C * L
    probes = jnp.concatenate(
        [jnp.zeros((1, C, L), jnp.float32),
         jnp.eye(CL, dtype=jnp.float32).reshape(CL, C, L)], axis=0)
    outs = _attn_chain(probes, w0, b0, ws, bs, w1, b1).reshape(CL + 1, CL)
    bias = outs[0]                                       # attn(0)
    t_mat = outs[1:] - bias[None, :]                     # row i = d attn / d x_i
    return t_mat, bias.reshape(1, CL)


def lka_reference(x, w0, b0, ws, bs, w1, b1):
    """Pure-JAX mirror of the PyTorch LKA module (NCW layout), for validation."""
    return x * _attn_chain(x, w0, b0, ws, bs, w1, b1)


if __name__ == "__main__":
    B, C, L = BATCH, D_MODEL, SEQ
    key = jax.random.PRNGKey(0)
    ks = jax.random.split(key, 7)
    scale = jnp.float32(0.1)

    # Input in PyTorch NCW layout: (batch, dim, seq)
    x = jax.random.normal(ks[0], (B, C, L), jnp.float32)

    # Deterministic synthetic parameters (shapes implied by the module __init__)
    w0 = scale * jax.random.normal(ks[1], (5, C), jnp.float32)   # conv0 taps (k, c)
    b0 = scale * jax.random.normal(ks[2], (C,), jnp.float32)
    ws = scale * jax.random.normal(ks[3], (7, C), jnp.float32)   # conv_spatial taps
    bs = scale * jax.random.normal(ks[4], (C,), jnp.float32)
    w1 = scale * jax.random.normal(ks[5], (C, C), jnp.float32)   # conv1.weight (out, in)
    b1 = scale * jax.random.normal(ks[6], (C,), jnp.float32)

    t_mat, bias_row = pack_affine(C, L, w0, b0, ws, bs, w1, b1)

    out = lka_forward(x, t_mat, bias_row)
    out = jax.block_until_ready(out)

    ref = lka_reference(x, w0, b0, ws, bs, w1, b1)
    assert out.shape == (B, C, L), out.shape
    assert bool(jnp.all(jnp.isfinite(out)))
    max_err = float(jnp.max(jnp.abs(out - ref)))
    assert bool(jnp.allclose(out, ref, atol=2e-3, rtol=2e-3)), max_err

    print("KERNEL_OK")
</pallas_src>

<mosaic_0001>
module attributes {stable_mosaic.version = 11 : i64} {
  func.func @lka_kernel(%arg0: memref<2x512xf32, #tpu.memory_space<vmem>>, %arg1: memref<512x512xf32, #tpu.memory_space<vmem>>, %arg2: memref<1x512xf32, #tpu.memory_space<vmem>>, %arg3: memref<2x512xf32, #tpu.memory_space<vmem>>) attributes {dimension_semantics = [], scalar_prefetch = 0 : i64, scratch_operands = 0 : i64, tpu.core_type = #tpu.core_type<tc>} {
    %c0 = arith.constant 0 : index
    %c0_0 = arith.constant 0 : index
    %0 = vector.load %arg0[%c0, %c0_0] : memref<2x512xf32, #tpu.memory_space<vmem>>, vector<2x512xf32>
    %c0_1 = arith.constant 0 : index
    %c0_2 = arith.constant 0 : index
    %1 = vector.load %arg1[%c0_1, %c0_2] : memref<512x512xf32, #tpu.memory_space<vmem>>, vector<512x512xf32>
    %cst = arith.constant dense<0.000000e+00> : vector<2x512xf32>
    %2 = tpu.matmul %0, %1, %cst {dimension_numbers = #tpu.dot_dimension_numbers<[1], [0], [0], [1], [0, 0, 1, 1], [], []>} : vector<2x512xf32>, vector<512x512xf32>, vector<2x512xf32> -> vector<2x512xf32>
    %c0_3 = arith.constant 0 : index
    %c0_4 = arith.constant 0 : index
    %3 = vector.load %arg2[%c0_3, %c0_4] : memref<1x512xf32, #tpu.memory_space<vmem>>, vector<1x512xf32>
    %4 = vector.broadcast %3 : vector<1x512xf32> to vector<2x512xf32>
    %5 = arith.addf %2, %4 : vector<2x512xf32>
    %6 = arith.mulf %0, %5 : vector<2x512xf32>
    %c0_5 = arith.constant 0 : index
    %c0_6 = arith.constant 0 : index
    %7 = vector.load %arg3[%c0_5, %c0_6] : memref<2x512xf32, #tpu.memory_space<vmem>>, vector<2x512xf32>
    tpu.vector_store %arg3[%c0_5, %c0_6], %6 {strides = array<i32>} : memref<2x512xf32, #tpu.memory_space<vmem>>, vector<2x512xf32>,
    return
  }
}

</mosaic_0001>

<bundles_post_ra>
// kernel: lka_forward.1
= control target key start
LH: loop header
LB: loop body
LE: loop exit
PB: predicated region body
PF: predicated region fallthrough
CT: control target
= control target key end

     0   :  { %8 = vsyncpa [#allocation3], 0  ;;  %s935_s12 = smov [#allocation2]   ;;  %s1011_s0 = inlined_call_operand.vmem [shape: f32[2,512], index: 0, kind: input, shape index: {}]   ;;  %s1012_s1 = inlined_call_operand.hbm [shape: f32[512,512], index: 1, kind: input, shape index: {}]   ;;  %s1013_s2 = inlined_call_operand.vmem [shape: f32[1,512], index: 2, kind: input, shape index: {}]   ;;  %s1014_s3 = inlined_call_operand.vmem [shape: f32[2,512], index: 3, kind: output, shape index: {}]  }
   0x1   :  { %s16_s13 = sshll.u32 %s935_s12, 4  ;;  %s911_s16 = scalar_lea.hbm %s1012_s1, 32768  ;;  %s17_s13 = int_to_ptr.vmem [resolvable:$true] %s16_s13 }
   0x2   :  { %p912_p0 = scmp.ne.s32.totalorder %s1012_s1, %s911_s16  ;;  %p915_p1 = scmp.lt.u32.totalorder %s911_s16, %s1012_s1 }
   0x4   :  { %p917_p2 = pnand %p915_p1, %p912_p0 }
   0x6   :  { %920 = shalt.err (!%p917_p2)
}
   0x7   :  { %s921_s21 = scalar_lea.vmem %s17_s13, 32768  ;;  %p926_p4 = scmp.lt.s32.totalorder %s17_s13, %s17_s13 }
   0x8   :  { %p922_p3 = scmp.ne.s32.totalorder %s17_s13, %s921_s21  ;;  %p927_p5 = scmp.lt.s32.totalorder %s921_s21, %s921_s21 }
   0xa   :  { %p928_p6 = por %p927_p5, %p926_p4 }
   0xc   :  { %p929_p7 = pnand %p928_p6, %p922_p3 }
   0xe   :  { %932 = shalt.err (!%p929_p7)
}
   0xf   :  { %s936_s22 = smov 512   ;;  %s937_s23 = smov 32  }
  0x10   :  { %22 = dma.hbm_to_vmem [thread:$0]  %s1012_s1, 32768, %s17_s13, [#allocation3], %s936_s22, %s936_s22, %s937_s23  }
  0x11   :  { %933 = dma.done.wait [#allocation3], 32768  }
  0x12   :  { %934 = vsyncadd [#allocation3], 4294934528  ;;  %v30_v0 = vld [vmem:[#allocation2 + $0x8] sm:$0xff]  ;;  %v32_v2 = vld [vmem:[#allocation2 + $0x18] sm:$0xff] }
  0x13   :  { %v34_v1 = vld [vmem:[#allocation2 + $0x28] sm:$0xff]  ;;  %v36_v4 = vld [vmem:[#allocation2 + $0x38] sm:$0xff]  ;;  %v29_v5 = vld [vmem:[#allocation2] sm:$0xff] }
  0x14   :  { %v642_v3 = vpack.c.bf16 %v34_v1, %v30_v0  ;;  %v33_v6 = vld [vmem:[#allocation2 + $0x20] sm:$0xff]  ;;  %v770_v7 = vpack.c.bf16 %v36_v4, %v32_v2  ;;  %v31_v9 = vld [vmem:[#allocation2 + $0x10] sm:$0xff]  ;;  %v38_v11 = vld [vmem:[#allocation2 + $0x48] sm:$0xff] }
  0x15   :  { %v644_v8 = vpack.c.bf16 %v33_v6, %v29_v5  ;;  %v35_v10 = vld [vmem:[#allocation2 + $0x30] sm:$0xff]  ;;  %v42_v13 = vld [vmem:[#allocation2 + $0x68] sm:$0xff]  ;;  %v40_v14 = vld [vmem:[#allocation2 + $0x58] sm:$0xff] }
  0x16   :  { %643 = vmatprep.subr.bf16.mxu0 %v642_v3  ;;  %v772_v12 = vpack.c.bf16 %v35_v10, %v31_v9  ;;  %v44_v15 = vld [vmem:[#allocation2 + $0x78] sm:$0xff]  ;;  %771 = vmatprep.subr.bf16.mxu1 %v770_v7  ;;  %v646_v16 = vpack.c.bf16 %v42_v13, %v38_v11  ;;  %v37_v18 = vld [vmem:[#allocation2 + $0x40] sm:$0xff]  ;;  %v39_v20 = vld [vmem:[#allocation2 + $0x50] sm:$0xff] }
  0x17   :  { %645 = vmatpush1.bf16.msra.mxu0 %v644_v8  ;;  %v774_v17 = vpack.c.bf16 %v44_v15, %v40_v14  ;;  %v41_v19 = vld [vmem:[#allocation2 + $0x60] sm:$0xff]  ;;  %v43_v22 = vld [vmem:[#allocation2 + $0x70] sm:$0xff]  ;;  %v46_v23 = vld [vmem:[#allocation2 + $0x88] sm:$0xff] }
  0x18   :  { %773 = vmatpush1.bf16.msra.mxu1 %v772_v12  ;;  %v648_v21 = vpack.c.bf16 %v41_v19, %v37_v18  ;;  %v50_v24 = vld [vmem:[#allocation2 + $0xa8] sm:$0xff]  ;;  %647 = vmatprep.subr.bf16.mxu0 %v646_v16  ;;  %v776_v25 = vpack.c.bf16 %v43_v22, %v39_v20  ;;  %v48_v27 = vld [vmem:[#allocation2 + $0x98] sm:$0xff]  ;;  %v45_v29 = vld [vmem:[#allocation2 + $0x80] sm:$0xff] }
  0x19   :  { %775 = vmatprep.subr.bf16.mxu1 %v774_v17  ;;  %v650_v26 = vpack.c.bf16 %v50_v24, %v46_v23  ;;  %v52_v28 = vld [vmem:[#allocation2 + $0xb8] sm:$0xff]  ;;  %v49_v31 = vld [vmem:[#allocation2 + $0xa0] sm:$0xff]  ;;  %v47_v32 = vld [vmem:[#allocation2 + $0x90] sm:$0xff] }
  0x1a   :  { %v778_v30 = vpack.c.bf16 %v52_v28, %v48_v27  ;;  %v51_v33 = vld [vmem:[#allocation2 + $0xb0] sm:$0xff]  ;;  %v652_v34 = vpack.c.bf16 %v49_v31, %v45_v29  ;;  %v54_v35 = vld [vmem:[#allocation2 + $0xc8] sm:$0xff]  ;;  %v56_v37 = vld [vmem:[#allocation2 + $0xd8] sm:$0xff] }
  0x1b   :  { %649 = vmatpush1.bf16.msra.mxu0 %v648_v21  ;;  %v58_v36 = vld [vmem:[#allocation2 + $0xe8] sm:$0xff]  ;;  %v780_v38 = vpack.c.bf16 %v51_v33, %v47_v32  ;;  %v60_v40 = vld [vmem:[#allocation2 + $0xf8] sm:$0xff]  ;;  %v53_v41 = vld [vmem:[#allocation2 + $0xc0] sm:$0xff] }
  0x1c   :  { %777 = vmatpush1.bf16.msra.mxu1 %v776_v25  ;;  %651 = vmatprep.subr.bf16.mxu0 %v650_v26  ;;  %v654_v39 = vpack.c.bf16 %v58_v36, %v54_v35  ;;  %v57_v42 = vld [vmem:[#allocation2 + $0xe0] sm:$0xff]  ;;  %v782_v43 = vpack.c.bf16 %v60_v40, %v56_v37  ;;  %v55_v44 = vld [vmem:[#allocation2 + $0xd0] sm:$0xff]  ;;  %v62_v46 = vld [vmem:[#allocation2 + $0x108] sm:$0xff] }
  0x1d   :  { %779 = vmatprep.subr.bf16.mxu1 %v778_v30  ;;  %v59_v45 = vld [vmem:[#allocation2 + $0xf0] sm:$0xff]  ;;  %v66_v47 = vld [vmem:[#allocation2 + $0x128] sm:$0xff]  ;;  %v64_v48 = vld [vmem:[#allocation2 + $0x118] sm:$0xff]  ;;  %v656_v50 = vpack.c.bf16 %v57_v42, %v53_v41 }
  0x1e   :  { %v68_v49 = vld [vmem:[#allocation2 + $0x138] sm:$0xff]  ;;  %v784_v51 = vpack.c.bf16 %v59_v45, %v55_v44  ;;  %v658_v52 = vpack.c.bf16 %v66_v47, %v62_v46  ;;  %v61_v53 = vld [vmem:[#allocation2 + $0x100] sm:$0xff]  ;;  %v63_v55 = vld [vmem:[#allocation2 + $0x110] sm:$0xff]  ;;  %v287_v46 = vlaneseq  ;;  %v938_v47 = vmov 1983009808  }
  0x1f   :  { %653 = vmatpush1.bf16.msra.mxu0 %v652_v34  ;;  %v65_v54 = vld [vmem:[#allocation2 + $0x120] sm:$0xff]  ;;  %v786_v56 = vpack.c.bf16 %v68_v49, %v64_v48  ;;  %v67_v57 = vld [vmem:[#allocation2 + $0x130] sm:$0xff]  ;;  %v70_v58 = vld [vmem:[#allocation2 + $0x148] sm:$0xff]  ;;  %v310_v48 = vunpack.c.l.s4 %v938_v47 }
  0x20   :  { %781 = vmatpush1.bf16.msra.mxu1 %v780_v38  ;;  %655 = vmatprep.subr.bf16.mxu0 %v654_v39  ;;  %v74_v59 = vld [vmem:[#allocation2 + $0x168] sm:$0xff]  ;;  %v72_v60 = vld [vmem:[#allocation2 + $0x158] sm:$0xff]  ;;  %v660_v62 = vpack.c.bf16 %v65_v54, %v61_v53  ;;  %v788_v63 = vpack.c.bf16 %v67_v57, %v63_v55  ;;  %v69_v1 = vld [vmem:[#allocation2 + $0x140] sm:$0xff] }
  0x21   :  { %783 = vmatprep.subr.bf16.mxu1 %v782_v43  ;;  %v76_v61 = vld [vmem:[#allocation2 + $0x178] sm:$0xff]  ;;  %v662_v0 = vpack.c.bf16 %v74_v59, %v70_v58  ;;  %v73_v2 = vld [vmem:[#allocation2 + $0x160] sm:$0xff]  ;;  %v71_v3 = vld [vmem:[#allocation2 + $0x150] sm:$0xff] }
  0x22   :  { %v790_v4 = vpack.c.bf16 %v76_v61, %v72_v60  ;;  %v75_v5 = vld [vmem:[#allocation2 + $0x170] sm:$0xff]  ;;  %v78_v6 = vld [vmem:[#allocation2 + $0x188] sm:$0xff]  ;;  %v80_v8 = vld [vmem:[#allocation2 + $0x198] sm:$0xff]  ;;  %v664_v10 = vpack.c.bf16 %v73_v2, %v69_v1  ;;  %v971_v61 = vshrl.u32 %v287_v46, 7 }
  0x23   :  { %657 = vmatpush1.bf16.msra.mxu0 %v656_v50  ;;  %v82_v7 = vld [vmem:[#allocation2 + $0x1a8] sm:$0xff]  ;;  %v84_v9 = vld [vmem:[#allocation2 + $0x1b8] sm:$0xff]  ;;  %v792_v11 = vpack.c.bf16 %v75_v5, %v71_v3  ;;  %v77_v13 = vld [vmem:[#allocation2 + $0x180] sm:$0xff] }
  0x24   :  { %785 = vmatpush1.bf16.msra.mxu1 %v784_v51  ;;  %659 = vmatprep.subr.bf16.mxu0 %v658_v52  ;;  %v666_v12 = vpack.c.bf16 %v82_v7, %v78_v6  ;;  %v81_v14 = vld [vmem:[#allocation2 + $0x1a0] sm:$0xff]  ;;  %v79_v15 = vld [vmem:[#allocation2 + $0x190] sm:$0xff]  ;;  %v794_v16 = vpack.c.bf16 %v84_v9, %v80_v8  ;;  %v86_v18 = vld [vmem:[#allocation2 + $0x1c8] sm:$0xff] }
  0x25   :  { %787 = vmatprep.subr.bf16.mxu1 %v786_v56  ;;  %v83_v17 = vld [vmem:[#allocation2 + $0x1b0] sm:$0xff]  ;;  %v90_v19 = vld [vmem:[#allocation2 + $0x1e8] sm:$0xff]  ;;  %v88_v20 = vld [vmem:[#allocation2 + $0x1d8] sm:$0xff]  ;;  %v668_v22 = vpack.c.bf16 %v81_v14, %v77_v13 }
  0x26   :  { %v92_v21 = vld [vmem:[#allocation2 + $0x1f8] sm:$0xff]  ;;  %v796_v23 = vpack.c.bf16 %v83_v17, %v79_v15  ;;  %v670_v24 = vpack.c.bf16 %v90_v19, %v86_v18  ;;  %v85_v25 = vld [vmem:[#allocation2 + $0x1c0] sm:$0xff]  ;;  %v87_v27 = vld [vmem:[#allocation2 + $0x1d0] sm:$0xff] }
  0x27   :  { %661 = vmatpush1.bf16.msra.mxu0 %v660_v62  ;;  %v89_v26 = vld [vmem:[#allocation2 + $0x1e0] sm:$0xff]  ;;  %v798_v28 = vpack.c.bf16 %v92_v21, %v88_v20  ;;  %v91_v29 = vld [vmem:[#allocation2 + $0x1f0] sm:$0xff]  ;;  %v94_v30 = vld [vmem:[#allocation2 + $0x208] sm:$0xff]  ;;  %v311_v62 = vunpack.c.0.s8 %v310_v48 }
  0x28   :  { %789 = vmatpush1.bf16.msra.mxu1 %v788_v63  ;;  %663 = vmatprep.subr.bf16.mxu0 %v662_v0  ;;  %v98_v31 = vld [vmem:[#allocation2 + $0x228] sm:$0xff]  ;;  %v96_v32 = vld [vmem:[#allocation2 + $0x218] sm:$0xff]  ;;  %v672_v34 = vpack.c.bf16 %v89_v26, %v85_v25  ;;  %v800_v35 = vpack.c.bf16 %v91_v29, %v87_v27  ;;  %v93_v37 = vld [vmem:[#allocation2 + $0x200] sm:$0xff] }
  0x29   :  { %791 = vmatprep.subr.bf16.mxu1 %v790_v4  ;;  %v100_v33 = vld [vmem:[#allocation2 + $0x238] sm:$0xff]  ;;  %v674_v36 = vpack.c.bf16 %v98_v31, %v94_v30  ;;  %v97_v38 = vld [vmem:[#allocation2 + $0x220] sm:$0xff]  ;;  %v95_v39 = vld [vmem:[#allocation2 + $0x210] sm:$0xff] }
  0x2a   :  { %v802_v40 = vpack.c.bf16 %v100_v33, %v96_v32  ;;  %v99_v41 = vld [vmem:[#allocation2 + $0x230] sm:$0xff]  ;;  %v102_v42 = vld [vmem:[#allocation2 + $0x248] sm:$0xff]  ;;  %v104_v44 = vld [vmem:[#allocation2 + $0x258] sm:$0xff]  ;;  %v676_v49 = vpack.c.bf16 %v97_v38, %v93_v37 }
  0x2b   :  { %665 = vmatpush1.bf16.msra.mxu0 %v664_v10  ;;  %v106_v43 = vld [vmem:[#allocation2 + $0x268] sm:$0xff]  ;;  %v108_v45 = vld [vmem:[#allocation2 + $0x278] sm:$0xff]  ;;  %v804_v50 = vpack.c.bf16 %v99_v41, %v95_v39  ;;  %v101_v52 = vld [vmem:[#allocation2 + $0x240] sm:$0xff] }
  0x2c   :  { %793 = vmatpush1.bf16.msra.mxu1 %v792_v11  ;;  %667 = vmatprep.subr.bf16.mxu0 %v666_v12  ;;  %v678_v51 = vpack.c.bf16 %v106_v43, %v102_v42  ;;  %v105_v53 = vld [vmem:[#allocation2 + $0x260] sm:$0xff]  ;;  %v103_v54 = vld [vmem:[#allocation2 + $0x250] sm:$0xff]  ;;  %v806_v55 = vpack.c.bf16 %v108_v45, %v104_v44  ;;  %v110_v57 = vld [vmem:[#allocation2 + $0x288] sm:$0xff]  ;;  %v974_v11 = vsub.s32 %v311_v62, %v971_v61 }
  0x2d   :  { %795 = vmatprep.subr.bf16.mxu1 %v794_v16  ;;  %v107_v56 = vld [vmem:[#allocation2 + $0x270] sm:$0xff]  ;;  %v114_v58 = vld [vmem:[#allocation2 + $0x2a8] sm:$0xff]  ;;  %v112_v59 = vld [vmem:[#allocation2 + $0x298] sm:$0xff]  ;;  %v680_v63 = vpack.c.bf16 %v105_v53, %v101_v52 }
  0x2e   :  { %v116_v60 = vld [vmem:[#allocation2 + $0x2b8] sm:$0xff]  ;;  %v808_v0 = vpack.c.bf16 %v107_v56, %v103_v54  ;;  %v682_v1 = vpack.c.bf16 %v114_v58, %v110_v57  ;;  %v109_v2 = vld [vmem:[#allocation2 + $0x280] sm:$0xff]  ;;  %v111_v4 = vld [vmem:[#allocation2 + $0x290] sm:$0xff] }
  0x2f   :  { %669 = vmatpush1.bf16.msra.mxu0 %v668_v22  ;;  %v113_v3 = vld [vmem:[#allocation2 + $0x2a0] sm:$0xff]  ;;  %v810_v5 = vpack.c.bf16 %v116_v60, %v112_v59  ;;  %v115_v6 = vld [vmem:[#allocation2 + $0x2b0] sm:$0xff]  ;;  %v118_v7 = vld [vmem:[#allocation2 + $0x2c8] sm:$0xff] }
  0x30   :  { %797 = vmatpush1.bf16.msra.mxu1 %v796_v23  ;;  %671 = vmatprep.subr.bf16.mxu0 %v670_v24  ;;  %v122_v8 = vld [vmem:[#allocation2 + $0x2e8] sm:$0xff]  ;;  %v120_v9 = vld [vmem:[#allocation2 + $0x2d8] sm:$0xff]  ;;  %v684_v12 = vpack.c.bf16 %v113_v3, %v109_v2  ;;  %v117_v13 = vld [vmem:[#allocation2 + $0x2c0] sm:$0xff]  ;;  %v812_v14 = vpack.c.bf16 %v115_v6, %v111_v4 }
  0x31   :  { %799 = vmatprep.subr.bf16.mxu1 %v798_v28  ;;  %v124_v10 = vld [vmem:[#allocation2 + $0x2f8] sm:$0xff]  ;;  %v686_v15 = vpack.c.bf16 %v122_v8, %v118_v7  ;;  %v121_v16 = vld [vmem:[#allocation2 + $0x2e0] sm:$0xff]  ;;  %v119_v17 = vld [vmem:[#allocation2 + $0x2d0] sm:$0xff] }
  0x32   :  { %v123_v18 = vld [vmem:[#allocation2 + $0x2f0] sm:$0xff]  ;;  %v814_v19 = vpack.c.bf16 %v124_v10, %v120_v9  ;;  %v126_v20 = vld [vmem:[#allocation2 + $0x308] sm:$0xff]  ;;  %v979_v22 = vld [vmem:[%s1011_s0] sm:$0xff]  ;;  %v688_v26 = vpack.c.bf16 %v121_v16, %v117_v13 }
  0x33   :  { %673 = vmatpush1.bf16.msra.mxu0 %v672_v34  ;;  %v130_v21 = vld [vmem:[#allocation2 + $0x328] sm:$0xff]  ;;  %v128_v23 = vld [vmem:[#allocation2 + $0x318] sm:$0xff]  ;;  %v983_v25 = vrot.slane %v979_v22, %v974_v11  ;;  %v816_v27 = vpack.c.bf16 %v123_v18, %v119_v17  ;;  %v125_v29 = vld [vmem:[#allocation2 + $0x300] sm:$0xff]  ;;  %v308_v10 = vcombine.high %v979_v22, %v979_v22 }
  0x34   :  { %801 = vmatpush1.bf16.msra.mxu1 %v800_v35  ;;  %675 = vmatprep.subr.bf16.mxu0 %v674_v36  ;;  %v132_v24 = vld [vmem:[#allocation2 + $0x338] sm:$0xff]  ;;  %v690_v28 = vpack.c.bf16 %v130_v21, %v126_v20  ;;  %v129_v30 = vld [vmem:[#allocation2 + $0x320] sm:$0xff]  ;;  %v127_v31 = vld [vmem:[#allocation2 + $0x310] sm:$0xff] }
  0x35   :  { %803 = vmatprep.subr.bf16.mxu1 %v802_v40  ;;  %v323_v32 = vcombine.high %v983_v25, %v983_v25  ;;  %v818_v33 = vpack.c.bf16 %v132_v24, %v128_v23  ;;  %v131_v34 = vld [vmem:[#allocation2 + $0x330] sm:$0xff]  ;;  %v134_v35 = vld [vmem:[#allocation2 + $0x348] sm:$0xff]  ;;  %v136_v37 = vld [vmem:[#allocation2 + $0x358] sm:$0xff]  ;;  %v692_v39 = vpack.c.bf16 %v129_v30, %v125_v29 }
  0x36   :  { %v138_v36 = vld [vmem:[#allocation2 + $0x368] sm:$0xff]  ;;  %v140_v38 = vld [vmem:[#allocation2 + $0x378] sm:$0xff]  ;;  %v820_v40 = vpack.c.bf16 %v131_v34, %v127_v31  ;;  %v133_v42 = vld [vmem:[#allocation2 + $0x340] sm:$0xff] }
  0x37   :  { %677 = vmatpush1.bf16.msra.mxu0 %v676_v49  ;;  %393 = vmatprep.mubr.f32.mxu0 %v323_v32  ;;  %v694_v41 = vpack.c.bf16 %v138_v36, %v134_v35  ;;  %v137_v43 = vld [vmem:[#allocation2 + $0x360] sm:$0xff]  ;;  %v135_v44 = vld [vmem:[#allocation2 + $0x350] sm:$0xff]  ;;  %v822_v45 = vpack.c.bf16 %v140_v38, %v136_v37  ;;  %v142_v47 = vld [vmem:[#allocation2 + $0x388] sm:$0xff] }
  0x38   :  { %805 = vmatpush1.bf16.msra.mxu1 %v804_v50  ;;  %679 = vmatprep.subr.bf16.mxu0 %v678_v51  ;;  %v139_v46 = vld [vmem:[#allocation2 + $0x370] sm:$0xff]  ;;  %v146_v48 = vld [vmem:[#allocation2 + $0x3a8] sm:$0xff]  ;;  %v144_v49 = vld [vmem:[#allocation2 + $0x398] sm:$0xff]  ;;  %v696_v51 = vpack.c.bf16 %v137_v43, %v133_v42 }
  0x39   :  { %807 = vmatprep.subr.bf16.mxu1 %v806_v55  ;;  %535 = vmatprep.mubr.f32.mxu1 %v323_v32  ;;  %v148_v50 = vld [vmem:[#allocation2 + $0x3b8] sm:$0xff]  ;;  %v824_v52 = vpack.c.bf16 %v139_v46, %v135_v44  ;;  %v698_v53 = vpack.c.bf16 %v146_v48, %v142_v47  ;;  %v141_v54 = vld [vmem:[#allocation2 + $0x380] sm:$0xff]  ;;  %v143_v56 = vld [vmem:[#allocation2 + $0x390] sm:$0xff] }
  0x3a   :  { %v145_v55 = vld [vmem:[#allocation2 + $0x3a0] sm:$0xff]  ;;  %v826_v57 = vpack.c.bf16 %v148_v50, %v144_v49  ;;  %v147_v58 = vld [vmem:[#allocation2 + $0x3b0] sm:$0xff]  ;;  %v150_v59 = vld [vmem:[#allocation2 + $0x3c8] sm:$0xff] }
  0x3b   :  { %681 = vmatpush1.bf16.msra.mxu0 %v680_v63  ;;  %v154_v60 = vld [vmem:[#allocation2 + $0x3e8] sm:$0xff]  ;;  %v152_v62 = vld [vmem:[#allocation2 + $0x3d8] sm:$0xff]  ;;  %v149_v3 = vld [vmem:[#allocation2 + $0x3c0] sm:$0xff] }
  0x3c   :  { %809 = vmatpush1.bf16.msra.mxu1 %v808_v0  ;;  %683 = vmatprep.subr.bf16.mxu0 %v682_v1  ;;  %v156_v63 = vld [vmem:[#allocation2 + $0x3f8] sm:$0xff]  ;;  %v700_v0 = vpack.c.bf16 %v145_v55, %v141_v54  ;;  %v828_v1 = vpack.c.bf16 %v147_v58, %v143_v56  ;;  %v702_v2 = vpack.c.bf16 %v154_v60, %v150_v59  ;;  %v153_v4 = vld [vmem:[#allocation2 + $0x3e0] sm:$0xff]  ;;  %v155_v7 = vld [vmem:[#allocation2 + $0x3f0] sm:$0xff] }
  0x3d   :  { %811 = vmatprep.subr.bf16.mxu1 %v810_v5  ;;  %v151_v5 = vld [vmem:[#allocation2 + $0x3d0] sm:$0xff]  ;;  %v830_v6 = vpack.c.bf16 %v156_v63, %v152_v62  ;;  %v158_v8 = vld [vmem:[#allocation2 + $0x408] sm:$0xff]  ;;  %v164_v13 = vld [vmem:[#allocation2 + $0x438] sm:$0xff] }
  0x3e   :  { %v162_v9 = vld [vmem:[#allocation2 + $0x428] sm:$0xff]  ;;  %v157_v17 = vld [vmem:[#allocation2 + $0x400] sm:$0xff]  ;;  %v163_v21 = vld [vmem:[#allocation2 + $0x430] sm:$0xff] }
  0x3f   :  { %685 = vmatpush1.bf16.msra.mxu0 %v684_v12  ;;  %v160_v12 = vld [vmem:[#allocation2 + $0x418] sm:$0xff]  ;;  %v706_v16 = vpack.c.bf16 %v162_v9, %v158_v8  ;;  %v161_v18 = vld [vmem:[#allocation2 + $0x420] sm:$0xff]  ;;  %v166_v23 = vld [vmem:[#allocation2 + $0x448] sm:$0xff] }
  0x40   :  { %813 = vmatpush1.bf16.msra.mxu1 %v812_v14  ;;  %687 = vmatprep.subr.bf16.mxu0 %v686_v15  ;;  %v704_v14 = vpack.c.bf16 %v153_v4, %v149_v3  ;;  %v832_v15 = vpack.c.bf16 %v155_v7, %v151_v5  ;;  %v834_v20 = vpack.c.bf16 %v164_v13, %v160_v12  ;;  %v170_v24 = vld [vmem:[#allocation2 + $0x468] sm:$0xff]  ;;  %v165_v32 = vld [vmem:[#allocation2 + $0x440] sm:$0xff]  ;;  %v167_v34 = vld [vmem:[#allocation2 + $0x450] sm:$0xff] }
  0x41   :  { %815 = vmatprep.subr.bf16.mxu1 %v814_v19  ;;  %v159_v19 = vld [vmem:[#allocation2 + $0x410] sm:$0xff]  ;;  %v708_v29 = vpack.c.bf16 %v161_v18, %v157_v17  ;;  %v710_v31 = vpack.c.bf16 %v170_v24, %v166_v23  ;;  %v174_v37 = vld [vmem:[#allocation2 + $0x488] sm:$0xff]  ;;  %v177_v46 = vld [vmem:[#allocation2 + $0x4a0] sm:$0xff] }
  0x42   :  { %v836_v30 = vpack.c.bf16 %v163_v21, %v159_v19  ;;  %v171_v36 = vld [vmem:[#allocation2 + $0x470] sm:$0xff]  ;;  %v178_v38 = vld [vmem:[#allocation2 + $0x4a8] sm:$0xff]  ;;  %v181_v56 = vld [vmem:[#allocation2 + $0x4c0] sm:$0xff] }
  0x43   :  { %689 = vmatpush1.bf16.msra.mxu0 %v688_v26  ;;  %v990_v26 = vrot.slane %v308_v10, %v974_v11  ;;  %v840_v43 = vpack.c.bf16 %v171_v36, %v167_v34  ;;  %v714_v44 = vpack.c.bf16 %v178_v38, %v174_v37  ;;  %v175_v47 = vld [vmem:[#allocation2 + $0x490] sm:$0xff]  ;;  %v182_v50 = vld [vmem:[#allocation2 + $0x4c8] sm:$0xff]  ;;  %v189_v5 = vld [vmem:[#allocation2 + $0x500] sm:$0xff] }
  0x44   :  { %817 = vmatpush1.bf16.msra.mxu1 %v816_v27  ;;  %691 = vmatprep.subr.bf16.mxu0 %v690_v28  ;;  %v168_v27 = vld [vmem:[#allocation2 + $0x458] sm:$0xff]  ;;  %v179_v49 = vld [vmem:[#allocation2 + $0x4b0] sm:$0xff]  ;;  %v190_v62 = vld [vmem:[#allocation2 + $0x508] sm:$0xff] }
  0x45   :  { %819 = vmatprep.subr.bf16.mxu1 %v818_v33  ;;  %v172_v28 = vld [vmem:[#allocation2 + $0x478] sm:$0xff]  ;;  %v169_v33 = vld [vmem:[#allocation2 + $0x460] sm:$0xff]  ;;  %v183_v58 = vld [vmem:[#allocation2 + $0x4d0] sm:$0xff] }
  0x46   :  { %v838_v35 = vpack.c.bf16 %v172_v28, %v168_v27  ;;  %v712_v42 = vpack.c.bf16 %v169_v33, %v165_v32  ;;  %v187_v60 = vld [vmem:[#allocation2 + $0x4f0] sm:$0xff]  ;;  %v194_v63 = vld [vmem:[#allocation2 + $0x528] sm:$0xff]  ;;  %v200_v13 = vld [vmem:[#allocation2 + $0x558] sm:$0xff] }
  0x47   :  { %693 = vmatpush1.bf16.msra.mxu0 %v692_v39  ;;  %v324_v39 = vcombine.high %v990_v26, %v990_v26  ;;  %v848_v3 = vpack.c.bf16 %v187_v60, %v183_v58  ;;  %v722_v4 = vpack.c.bf16 %v194_v63, %v190_v62  ;;  %v191_v7 = vld [vmem:[#allocation2 + $0x510] sm:$0xff]  ;;  %v198_v10 = vld [vmem:[#allocation2 + $0x548] sm:$0xff]  ;;  %v197_v18 = vld [vmem:[#allocation2 + $0x540] sm:$0xff] }
  0x48   :  { %821 = vmatpush1.bf16.msra.mxu1 %v820_v40  ;;  %695 = vmatprep.subr.bf16.mxu0 %v694_v41  ;;  %v176_v40 = vld [vmem:[#allocation2 + $0x498] sm:$0xff]  ;;  %v195_v9 = vld [vmem:[#allocation2 + $0x530] sm:$0xff]  ;;  %v202_v12 = vld [vmem:[#allocation2 + $0x568] sm:$0xff] }
  0x49   :  { %823 = vmatprep.subr.bf16.mxu1 %v822_v45  ;;  %v180_v41 = vld [vmem:[#allocation2 + $0x4b8] sm:$0xff]  ;;  %v173_v45 = vld [vmem:[#allocation2 + $0x480] sm:$0xff]  ;;  %v726_v17 = vpack.c.bf16 %v202_v12, %v198_v10  ;;  %v203_v23 = vld [vmem:[#allocation2 + $0x570] sm:$0xff] }
  0x4a   :  { %v842_v48 = vpack.c.bf16 %v180_v41, %v176_v40  ;;  %v716_v54 = vpack.c.bf16 %v177_v46, %v173_v45  ;;  %v201_v19 = vld [vmem:[#allocation2 + $0x560] sm:$0xff]  ;;  %v206_v24 = vld [vmem:[#allocation2 + $0x588] sm:$0xff]  ;;  %v208_v28 = vld [vmem:[#allocation2 + $0x598] sm:$0xff] }
  0x4b   :  { %697 = vmatpush1.bf16.msra.mxu0 %v696_v51  ;;  %v186_v51 = vld [vmem:[#allocation2 + $0x4e8] sm:$0xff]  ;;  %v205_v33 = vld [vmem:[#allocation2 + $0x580] sm:$0xff]  ;;  %v211_v37 = vld [vmem:[#allocation2 + $0x5b0] sm:$0xff] }
  0x4c   :  { %825 = vmatpush1.bf16.msra.mxu1 %v824_v52  ;;  %699 = vmatprep.subr.bf16.mxu0 %v698_v53  ;;  %v184_v52 = vld [vmem:[#allocation2 + $0x4d8] sm:$0xff]  ;;  %v718_v55 = vpack.c.bf16 %v186_v51, %v182_v50  ;;  %v210_v27 = vld [vmem:[#allocation2 + $0x5a8] sm:$0xff]  ;;  %v209_v34 = vld [vmem:[#allocation2 + $0x5a0] sm:$0xff] }
  0x4d   :  { %827 = vmatprep.subr.bf16.mxu1 %v826_v57  ;;  %v188_v53 = vld [vmem:[#allocation2 + $0x4f8] sm:$0xff]  ;;  %v185_v57 = vld [vmem:[#allocation2 + $0x4e0] sm:$0xff]  ;;  %v730_v32 = vpack.c.bf16 %v210_v27, %v206_v24  ;;  %v214_v38 = vld [vmem:[#allocation2 + $0x5c8] sm:$0xff] }
  0x4e   :  { %v846_v59 = vpack.c.bf16 %v188_v53, %v184_v52  ;;  %v216_v40 = vld [vmem:[#allocation2 + $0x5d8] sm:$0xff]  ;;  %v213_v45 = vld [vmem:[#allocation2 + $0x5c0] sm:$0xff]  ;;  %v222_v50 = vld [vmem:[#allocation2 + $0x608] sm:$0xff] }
  0x4f   :  { %701 = vmatpush1.bf16.msra.mxu0 %v700_v0  ;;  %v192_v0 = vld [vmem:[#allocation2 + $0x518] sm:$0xff]  ;;  %v217_v46 = vld [vmem:[#allocation2 + $0x5e0] sm:$0xff]  ;;  %v226_v51 = vld [vmem:[#allocation2 + $0x628] sm:$0xff] }
  0x50   :  { %829 = vmatpush1.bf16.msra.mxu1 %v828_v1  ;;  %703 = vmatprep.subr.bf16.mxu0 %v702_v2  ;;  %v196_v1 = vld [vmem:[#allocation2 + $0x538] sm:$0xff]  ;;  %v720_v2 = vpack.c.bf16 %v185_v57, %v181_v56  ;;  %v221_v56 = vld [vmem:[#allocation2 + $0x600] sm:$0xff]  ;;  %v223_v58 = vld [vmem:[#allocation2 + $0x610] sm:$0xff] }
  0x51   :  { %831 = vmatprep.subr.bf16.mxu1 %v830_v6  ;;  %v193_v6 = vld [vmem:[#allocation2 + $0x520] sm:$0xff]  ;;  %v850_v8 = vpack.c.bf16 %v196_v1, %v192_v0  ;;  %v220_v41 = vld [vmem:[#allocation2 + $0x5f8] sm:$0xff]  ;;  %v227_v60 = vld [vmem:[#allocation2 + $0x630] sm:$0xff] }
  0x52   :  { %v224_v52 = vld [vmem:[#allocation2 + $0x618] sm:$0xff]  ;;  %v225_v57 = vld [vmem:[#allocation2 + $0x620] sm:$0xff]  ;;  %v230_v62 = vld [vmem:[#allocation2 + $0x648] sm:$0xff] }
  0x53   :  { %705 = vmatpush1.bf16.msra.mxu0 %v704_v14  ;;  %v204_v14 = vld [vmem:[#allocation2 + $0x578] sm:$0xff]  ;;  %v234_v63 = vld [vmem:[#allocation2 + $0x668] sm:$0xff] }
  0x54   :  { %833 = vmatpush1.bf16.msra.mxu1 %v832_v15  ;;  %707 = vmatprep.subr.bf16.mxu0 %v706_v16  ;;  %v724_v15 = vpack.c.bf16 %v193_v6, %v189_v5  ;;  %v852_v16 = vpack.c.bf16 %v195_v9, %v191_v7  ;;  %v854_v21 = vpack.c.bf16 %v204_v14, %v200_v13  ;;  %v228_v53 = vld [vmem:[#allocation2 + $0x638] sm:$0xff]  ;;  %v229_v5 = vld [vmem:[#allocation2 + $0x640] sm:$0xff]  ;;  %v231_v7 = vld [vmem:[#allocation2 + $0x650] sm:$0xff] }
  0x55   :  { %835 = vmatprep.subr.bf16.mxu1 %v834_v20  ;;  %v199_v20 = vld [vmem:[#allocation2 + $0x550] sm:$0xff]  ;;  %v232_v0 = vld [vmem:[#allocation2 + $0x658] sm:$0xff]  ;;  %v233_v6 = vld [vmem:[#allocation2 + $0x660] sm:$0xff] }
  0x56   :  { %394 = vmatmul.mubr.f32.vlgmr.msra.gmra.mrb[0].mxu0 %v983_v25  ;;  %v236_v1 = vld [vmem:[#allocation2 + $0x678] sm:$0xff]  ;;  %v235_v9 = vld [vmem:[#allocation2 + $0x670] sm:$0xff]  ;;  %v238_v10 = vld [vmem:[#allocation2 + $0x688] sm:$0xff] }
  0x57   :  { %709 = vmatpush1.bf16.msra.mxu0 %v708_v29  ;;  %536 = vmatmul.mubr.f32.vlgmr.msra.gmra.mrb[0].mxu1 %v983_v25  ;;  %v844_v25 = vpack.c.bf16 %v179_v49, %v175_v47  ;;  %v212_v29 = vld [vmem:[#allocation2 + $0x5b8] sm:$0xff]  ;;  %v215_v47 = vld [vmem:[#allocation2 + $0x5d0] sm:$0xff]  ;;  %v242_v12 = vld [vmem:[#allocation2 + $0x6a8] sm:$0xff] }
  0x58   :  { %837 = vmatpush1.bf16.msra.mxu1 %v836_v30  ;;  %711 = vmatprep.subr.bf16.mxu0 %v710_v31  ;;  %v728_v30 = vpack.c.bf16 %v201_v19, %v197_v18  ;;  %v856_v31 = vpack.c.bf16 %v203_v23, %v199_v20  ;;  %v858_v36 = vpack.c.bf16 %v212_v29, %v208_v28  ;;  %v219_v49 = vld [vmem:[#allocation2 + $0x5f0] sm:$0xff]  ;;  %v240_v13 = vld [vmem:[#allocation2 + $0x698] sm:$0xff]  ;;  %v237_v18 = vld [vmem:[#allocation2 + $0x680] sm:$0xff] }
  0x59   :  { %839 = vmatprep.subr.bf16.mxu1 %v838_v35  ;;  %464 = vmatprep.mubr.f32.mxu0 %v324_v39  ;;  %v207_v35 = vld [vmem:[#allocation2 + $0x590] sm:$0xff]  ;;  %v244_v14 = vld [vmem:[#allocation2 + $0x6b8] sm:$0xff]  ;;  %v241_v19 = vld [vmem:[#allocation2 + $0x6a0] sm:$0xff] }
  0x5a   :  { %606 = vmatprep.mubr.f32.mxu1 %v324_v39  ;;  %v218_v39 = vld [vmem:[#allocation2 + $0x5e8] sm:$0xff]  ;;  %v239_v20 = vld [vmem:[#allocation2 + $0x690] sm:$0xff]  ;;  %v248_v28 = vld [vmem:[#allocation2 + $0x6d8] sm:$0xff] }
  0x5b   :  { %713 = vmatpush1.bf16.msra.mxu0 %v712_v42  ;;  %v732_v42 = vpack.c.bf16 %v209_v34, %v205_v33  ;;  %v243_v23 = vld [vmem:[#allocation2 + $0x6b0] sm:$0xff]  ;;  %v246_v24 = vld [vmem:[#allocation2 + $0x6c8] sm:$0xff]  ;;  %v252_v29 = vld [vmem:[#allocation2 + $0x6f8] sm:$0xff] }
  0x5c   :  { %841 = vmatpush1.bf16.msra.mxu1 %v840_v43  ;;  %715 = vmatprep.subr.bf16.mxu0 %v714_v44  ;;  %v860_v43 = vpack.c.bf16 %v211_v37, %v207_v35  ;;  %v734_v44 = vpack.c.bf16 %v218_v39, %v214_v38  ;;  %v250_v27 = vld [vmem:[#allocation2 + $0x6e8] sm:$0xff]  ;;  %v245_v33 = vld [vmem:[#allocation2 + $0x6c0] sm:$0xff]  ;;  %v247_v35 = vld [vmem:[#allocation2 + $0x6d0] sm:$0xff] }
  0x5d   :  { %843 = vmatprep.subr.bf16.mxu1 %v842_v48  ;;  %v862_v48 = vpack.c.bf16 %v220_v41, %v216_v40  ;;  %v249_v34 = vld [vmem:[#allocation2 + $0x6e0] sm:$0xff]  ;;  %v251_v37 = vld [vmem:[#allocation2 + $0x6f0] sm:$0xff]  ;;  %v254_v38 = vld [vmem:[#allocation2 + $0x708] sm:$0xff] }
  0x5e   :  { %v258_v39 = vld [vmem:[#allocation2 + $0x728] sm:$0xff]  ;;  %v256_v40 = vld [vmem:[#allocation2 + $0x718] sm:$0xff] }
  0x5f   :  { %717 = vmatpush1.bf16.msra.mxu0 %v716_v54  ;;  %v736_v54 = vpack.c.bf16 %v217_v46, %v213_v45  ;;  %v260_v41 = vld [vmem:[#allocation2 + $0x738] sm:$0xff]  ;;  %v253_v45 = vld [vmem:[#allocation2 + $0x700] sm:$0xff] }
  0x60   :  { %845 = vmatpush1.bf16.msra.mxu1 %v844_v25  ;;  %719 = vmatprep.subr.bf16.mxu0 %v718_v55  ;;  %v864_v25 = vpack.c.bf16 %v219_v49, %v215_v47  ;;  %v738_v55 = vpack.c.bf16 %v226_v51, %v222_v50  ;;  %v257_v46 = vld [vmem:[#allocation2 + $0x720] sm:$0xff]  ;;  %v255_v47 = vld [vmem:[#allocation2 + $0x710] sm:$0xff]  ;;  %v262_v50 = vld [vmem:[#allocation2 + $0x748] sm:$0xff] }
  0x61   :  { %847 = vmatprep.subr.bf16.mxu1 %v846_v59  ;;  %v866_v59 = vpack.c.bf16 %v228_v53, %v224_v52  ;;  %v259_v49 = vld [vmem:[#allocation2 + $0x730] sm:$0xff]  ;;  %v266_v51 = vld [vmem:[#allocation2 + $0x768] sm:$0xff]  ;;  %v264_v52 = vld [vmem:[#allocation2 + $0x758] sm:$0xff] }
  0x62   :  { %v268_v53 = vld [vmem:[#allocation2 + $0x778] sm:$0xff] }
  0x63   :  { %721 = vmatpush1.bf16.msra.mxu0 %v720_v2  ;;  %v740_v2 = vpack.c.bf16 %v225_v57, %v221_v56  ;;  %v261_v56 = vld [vmem:[#allocation2 + $0x740] sm:$0xff] }
  0x64   :  { %849 = vmatpush1.bf16.msra.mxu1 %v848_v3  ;;  %723 = vmatprep.subr.bf16.mxu0 %v722_v4  ;;  %v868_v3 = vpack.c.bf16 %v227_v60, %v223_v58  ;;  %v742_v4 = vpack.c.bf16 %v234_v63, %v230_v62  ;;  %v265_v57 = vld [vmem:[#allocation2 + $0x760] sm:$0xff]  ;;  %v263_v58 = vld [vmem:[#allocation2 + $0x750] sm:$0xff]  ;;  %v270_v62 = vld [vmem:[#allocation2 + $0x788] sm:$0xff] }
  0x65   :  { %851 = vmatprep.subr.bf16.mxu1 %v850_v8  ;;  %v870_v8 = vpack.c.bf16 %v236_v1, %v232_v0  ;;  %v267_v60 = vld [vmem:[#allocation2 + $0x770] sm:$0xff]  ;;  %v274_v63 = vld [vmem:[#allocation2 + $0x7a8] sm:$0xff]  ;;  %v272_v0 = vld [vmem:[#allocation2 + $0x798] sm:$0xff] }
  0x66   :  { %v276_v1 = vld [vmem:[#allocation2 + $0x7b8] sm:$0xff] }
  0x67   :  { %725 = vmatpush1.bf16.msra.mxu0 %v724_v15  ;;  %v744_v15 = vpack.c.bf16 %v233_v6, %v229_v5  ;;  %v269_v5 = vld [vmem:[#allocation2 + $0x780] sm:$0xff] }
  0x68   :  { %853 = vmatpush1.bf16.msra.mxu1 %v852_v16  ;;  %727 = vmatprep.subr.bf16.mxu0 %v726_v17  ;;  %v872_v16 = vpack.c.bf16 %v235_v9, %v231_v7  ;;  %v746_v17 = vpack.c.bf16 %v242_v12, %v238_v10  ;;  %v273_v6 = vld [vmem:[#allocation2 + $0x7a0] sm:$0xff]  ;;  %v271_v7 = vld [vmem:[#allocation2 + $0x790] sm:$0xff]  ;;  %v278_v10 = vld [vmem:[#allocation2 + $0x7c8] sm:$0xff] }
  0x69   :  { %855 = vmatprep.subr.bf16.mxu1 %v854_v21  ;;  %v874_v21 = vpack.c.bf16 %v244_v14, %v240_v13  ;;  %v275_v9 = vld [vmem:[#allocation2 + $0x7b0] sm:$0xff]  ;;  %v282_v12 = vld [vmem:[#allocation2 + $0x7e8] sm:$0xff]  ;;  %v280_v13 = vld [vmem:[#allocation2 + $0x7d8] sm:$0xff] }
  0x6a   :  { %v284_v14 = vld [vmem:[#allocation2 + $0x7f8] sm:$0xff] }
  0x6b   :  { %729 = vmatpush1.bf16.msra.mxu0 %v728_v30  ;;  %v748_v30 = vpack.c.bf16 %v241_v19, %v237_v18  ;;  %v277_v18 = vld [vmem:[#allocation2 + $0x7c0] sm:$0xff] }
  0x6c   :  { %857 = vmatpush1.bf16.msra.mxu1 %v856_v31  ;;  %731 = vmatprep.subr.bf16.mxu0 %v730_v32  ;;  %v876_v31 = vpack.c.bf16 %v243_v23, %v239_v20  ;;  %v750_v32 = vpack.c.bf16 %v250_v27, %v246_v24  ;;  %v281_v19 = vld [vmem:[#allocation2 + $0x7e0] sm:$0xff]  ;;  %v894_v20 = vpack.c.bf16 %v284_v14, %v280_v13  ;;  %v283_v23 = vld [vmem:[#allocation2 + $0x7f0] sm:$0xff] }
  0x6d   :  { %859 = vmatprep.subr.bf16.mxu1 %v858_v36  ;;  %v878_v36 = vpack.c.bf16 %v252_v29, %v248_v28  ;;  %v768_v24 = vpack.c.bf16 %v281_v19, %v277_v18  ;;  %v289_v28 = vsub.s32 0, %v971_v61  ;;  %v285_v29 = vld [vmem:[%s1013_s2] sm:$0xf] }
  0x6f   :  { %733 = vmatpush1.bf16.msra.mxu0 %v732_v42  ;;  %v752_v42 = vpack.c.bf16 %v249_v34, %v245_v33  ;;  %v290_v33 = vrot.slane %v285_v29, %v289_v28 }
  0x70   :  { %861 = vmatpush1.bf16.msra.mxu1 %v860_v43  ;;  %735 = vmatprep.subr.bf16.mxu0 %v734_v44  ;;  %v880_v43 = vpack.c.bf16 %v251_v37, %v247_v35  ;;  %v754_v44 = vpack.c.bf16 %v258_v39, %v254_v38 }
  0x71   :  { %863 = vmatprep.subr.bf16.mxu1 %v862_v48  ;;  %v882_v48 = vpack.c.bf16 %v260_v41, %v256_v40 }
  0x73   :  { %737 = vmatpush1.bf16.msra.mxu0 %v736_v54  ;;  %v756_v54 = vpack.c.bf16 %v257_v46, %v253_v45 }
  0x74   :  { %865 = vmatpush1.bf16.msra.mxu1 %v864_v25  ;;  %739 = vmatprep.subr.bf16.mxu0 %v738_v55  ;;  %v884_v25 = vpack.c.bf16 %v259_v49, %v255_v47  ;;  %v758_v55 = vpack.c.bf16 %v266_v51, %v262_v50 }
  0x75   :  { %867 = vmatprep.subr.bf16.mxu1 %v866_v59  ;;  %v886_v59 = vpack.c.bf16 %v268_v53, %v264_v52 }
  0x77   :  { %741 = vmatpush1.bf16.msra.mxu0 %v740_v2  ;;  %v760_v2 = vpack.c.bf16 %v265_v57, %v261_v56 }
  0x78   :  { %869 = vmatpush1.bf16.msra.mxu1 %v868_v3  ;;  %743 = vmatprep.subr.bf16.mxu0 %v742_v4  ;;  %v888_v3 = vpack.c.bf16 %v267_v60, %v263_v58  ;;  %v762_v4 = vpack.c.bf16 %v274_v63, %v270_v62 }
  0x79   :  { %871 = vmatprep.subr.bf16.mxu1 %v870_v8  ;;  %v890_v8 = vpack.c.bf16 %v276_v1, %v272_v0 }
  0x7b   :  { %745 = vmatpush1.bf16.msra.mxu0 %v744_v15  ;;  %v764_v15 = vpack.c.bf16 %v273_v6, %v269_v5 }
  0x7c   :  { %873 = vmatpush1.bf16.msra.mxu1 %v872_v16  ;;  %747 = vmatprep.subr.bf16.mxu0 %v746_v17  ;;  %v892_v16 = vpack.c.bf16 %v275_v9, %v271_v7  ;;  %v766_v17 = vpack.c.bf16 %v282_v12, %v278_v10 }
  0x7d   :  { %875 = vmatprep.subr.bf16.mxu1 %v874_v21  ;;  %v279_v21 = vld [vmem:[#allocation2 + $0x7d0] sm:$0xff] }
  0x7e   :  { %v896_v27 = vpack.c.bf16 %v283_v23, %v279_v21 }
  0x7f   :  { %749 = vmatpush1.bf16.msra.mxu0 %v748_v30  ;;  %v297_v30 = vsub.s32 2, %v971_v61 }
  0x80   :  { %877 = vmatpush1.bf16.msra.mxu1 %v876_v31  ;;  %751 = vmatprep.subr.bf16.mxu0 %v750_v32  ;;  %v293_v31 = vsub.s32 1, %v971_v61  ;;  %v301_v32 = vsub.s32 3, %v971_v61 }
  0x81   :  { %879 = vmatprep.subr.bf16.mxu1 %v878_v36  ;;  %v298_v34 = vrot.slane %v285_v29, %v297_v30 }
  0x82   :  { %v294_v35 = vrot.slane %v285_v29, %v293_v31  ;;  %v302_v36 = vrot.slane %v285_v29, %v301_v32 }
  0x83   :  { %753 = vmatpush1.bf16.msra.mxu0 %v752_v42 }
  0x84   :  { %881 = vmatpush1.bf16.msra.mxu1 %v880_v43  ;;  %755 = vmatprep.subr.bf16.mxu0 %v754_v44 }
  0x85   :  { %883 = vmatprep.subr.bf16.mxu1 %v882_v48 }
  0x87   :  { %757 = vmatpush1.bf16.msra.mxu0 %v756_v54 }
  0x88   :  { %885 = vmatpush1.bf16.msra.mxu1 %v884_v25  ;;  %759 = vmatprep.subr.bf16.mxu0 %v758_v55 }
  0x89   :  { %887 = vmatprep.subr.bf16.mxu1 %v886_v59 }
  0x8b   :  { %761 = vmatpush1.bf16.msra.mxu0 %v760_v2 }
  0x8c   :  { %889 = vmatpush1.bf16.msra.mxu1 %v888_v3  ;;  %763 = vmatprep.subr.bf16.mxu0 %v762_v4 }
  0x8d   :  { %891 = vmatprep.subr.bf16.mxu1 %v890_v8 }
  0x8f   :  { %765 = vmatpush1.bf16.msra.mxu0 %v764_v15 }
  0x90   :  { %893 = vmatpush1.bf16.msra.mxu1 %v892_v16  ;;  %767 = vmatprep.subr.bf16.mxu0 %v766_v17 }
  0x91   :  { %895 = vmatprep.subr.bf16.mxu1 %v894_v20 }
  0x93   :  { %769 = vmatpush1.bf16.msra.mxu0 %v768_v24 }
  0x94   :  { %897 = vmatpush1.bf16.msra.mxu1 %v896_v27 }
  0x96   :  { %465 = vmatmul.mubr.f32.vlgmr.msra.gmra.mrb[0].mxu0 %v990_v26 }
  0x97   :  { %607 = vmatmul.mubr.f32.vlgmr.msra.gmra.mrb[0].mxu1 %v990_v26 }
 0x169   :  { %v466_v37 = vpop.f32.mrb[0].mxu0 }
 0x16a   :  { %v898_v38 = vadd.f32 %v466_v37, %v290_v33  ;;  %v608_v39 = vpop.f32.mrb[0].mxu1  ;;  %v468_v26 = vpop.f32.mrb[1].mxu0 }
 0x16b   :  { %v900_v40 = vadd.f32 %v608_v39, %v298_v34  ;;  %v899_v41 = vadd.f32 %v468_v26, %v294_v35  ;;  %v610_v42 = vpop.f32.mrb[1].mxu1 }
 0x16c   :  { %v901_v43 = vadd.f32 %v610_v42, %v302_v36 }
 0x16d   :  { %v617_v44 = vcombine.low %v898_v38, %v899_v41 }
 0x16e   :  { %v618_v45 = vcombine.low %v900_v40, %v901_v43 }
 0x16f   :  { %v625_v46 = vrot.slane %v617_v44, %v974_v11 }
 0x170   :  { %v632_v47 = vrot.slane %v618_v45, %v974_v11 }
 0x172   :  { %v633_v48 = vcombine.low %v625_v46, %v632_v47 }
 0x174   :  { %v635_v61 = vmul.f32 %v633_v48, %v979_v22 }
 0x176   :  { %636 = vst [vmem:[%s1014_s3] sm:$0xff] %v635_v61 }
 0x177   :  { %641 = vsyncpa [#allocation3], 1 }

</bundles_post_ra>
